<compile_context>
chip_gen: v7x
topology: tpu7x:2x2x1
jax: 0.10.0
libtpu: 0.0.40
codegen_flags: <defaults>
</compile_context>

<pallas_src>
import functools

import jax
import jax.numpy as jnp
from jax import lax
from jax.experimental import pallas as pl
from jax.experimental.pallas import tpu as pltpu


def _round_up(x, m):
    return ((x + m - 1) // m) * m


def _cropped_nll_block_kernel(preds_ref, tgt_ref, out_ref, *, n_batch, n_classes, scale):
    # preds_ref: (TB, C, T) block of per-timestep log-probs (f32 or bf16), VMEM.
    # tgt_ref  : (TB, 1) int32 target classes for this batch-block, VMEM.
    # out_ref  : (1, 1) f32 accumulator; same output block every step, so it
    #            stays resident in VMEM across the whole grid (P3 pattern).
    i = pl.program_id(0)
    nb = pl.num_programs(0)

    @pl.when(i == 0)
    def _init():
        out_ref[...] = jnp.zeros_like(out_ref)

    # Upcast FIRST (v5e has no bf16 VPU/EUP; also keeps f32 accumulation).
    block = preds_ref[...].astype(jnp.float32)            # (TB, C, T)
    t_sum = jnp.sum(block, axis=-1)                        # (TB, C): sum over time (XLU)

    tb = t_sum.shape[0]
    # torch NLLLoss raises on out-of-range targets; we clamp instead (cheap,
    # explicit divergence — avoids selecting nothing / reading garbage).
    tgt = jnp.clip(tgt_ref[...], 0, n_classes - 1)         # (TB, 1) int32
    class_iota = lax.broadcasted_iota(jnp.int32, (tb, n_classes), 1)
    row_iota = lax.broadcasted_iota(jnp.int32, (tb, n_classes), 0) + i * tb
    # Select the target class per row; drop padded rows of a partial last block.
    mask = (class_iota == tgt) & (row_iota < n_batch)
    partial = jnp.sum(jnp.where(mask, t_sum, 0.0))         # scalar (f32)

    out_ref[...] += partial

    @pl.when(i == nb - 1)
    def _finalize():
        # NLL: negate and take the mean over batch and time.
        out_ref[...] = out_ref[...] * scale


def cropped_loss(preds, targets, *, block_batch=None):
    """CroppedLoss with NLLLoss.

    preds  : (B, C, T) (or (C, T)) per-timestep log-probabilities, f32 or bf16.
    targets: (B,) integer class indices.
    Returns a float32 scalar loss.
    """
    preds = jnp.asarray(preds)
    targets = jnp.asarray(targets, dtype=jnp.int32)
    if preds.ndim < 3:                                     # torch: preds.unsqueeze(dim=0)
        preds = preds[None]
    B, C, T = preds.shape
    assert C > 1, "NLL path assumes n_classes > 1"

    # --- pick the batch-block size TB -------------------------------------
    # Padded VMEM footprint of one row (C on sublanes, T on lanes).
    itemsize = preds.dtype.itemsize
    sub_granule = max(8, 32 // itemsize)                   # f32 -> 8, bf16 -> 16
    padded_row_bytes = _round_up(C, sub_granule) * _round_up(T, 128) * itemsize
    block_budget = 8 * 1024 * 1024                         # <= 8 MiB/block; x2 buffers fit 32 MiB scoped VMEM
    tb_cap = max(1, block_budget // padded_row_bytes)
    if block_batch is not None:
        tb_cap = min(tb_cap, int(block_batch))
    if tb_cap >= B:
        tb = B                                             # single fat block
    else:
        tb = max(8, (tb_cap // 8) * 8)                     # multiple of 8 -> (TB,1) targets block tiles
    n_blocks = pl.cdiv(B, tb)

    targets2d = targets.reshape(B, 1)                      # metadata-only reshape

    kernel = functools.partial(
        _cropped_nll_block_kernel,
        n_batch=B, n_classes=C, scale=-1.0 / (B * T),
    )

    out = pl.pallas_call(
        kernel,
        out_shape=jax.ShapeDtypeStruct((1, 1), jnp.float32),
        grid=(n_blocks,),
        in_specs=[
            pl.BlockSpec((tb, C, T), lambda i: (i, 0, 0)),  # contiguous batch-block of preds
            pl.BlockSpec((tb, 1), lambda i: (i, 0)),        # matching targets slice
        ],
        out_specs=pl.BlockSpec((1, 1), lambda i: (0, 0)),   # resident accumulator
        compiler_params=pltpu.CompilerParams(
            dimension_semantics=("arbitrary",),             # reduction over batch-blocks
            vmem_limit_bytes=32 * 1024 * 1024,
        ),
    )(preds, targets2d)

    return out[0, 0]                                        # f32 scalar


if __name__ == "__main__":
    key = jax.random.PRNGKey(0)
    k1, k2, k3, k4 = jax.random.split(key, 4)

    # Small canonical shape (single fat block, grid == 1).
    B, C, T = 2, 4, 16
    logits = jax.random.normal(k1, (B, C, T), dtype=jnp.float32)
    preds = jax.nn.log_softmax(logits, axis=1)
    targets = jax.random.randint(k2, (B,), 0, C, dtype=jnp.int32)

    loss = jax.block_until_ready(cropped_loss(preds, targets))
    avg_ref = jnp.mean(preds, axis=2)
    ref = -jnp.mean(avg_ref[jnp.arange(B), targets])
    assert jnp.allclose(loss, ref, atol=1e-5, rtol=1e-5), (loss, ref)

    # Multi-block path with a padded last block (exercises accumulation + masking).
    B2, C2, T2 = 20, 4, 16
    logits2 = jax.random.normal(k3, (B2, C2, T2), dtype=jnp.float32)
    preds2 = jax.nn.log_softmax(logits2, axis=1)
    targets2 = jax.random.randint(k4, (B2,), 0, C2, dtype=jnp.int32)

    loss2 = jax.block_until_ready(cropped_loss(preds2, targets2, block_batch=8))
    avg_ref2 = jnp.mean(preds2, axis=2)
    ref2 = -jnp.mean(avg_ref2[jnp.arange(B2), targets2])
    assert jnp.allclose(loss2, ref2, atol=1e-5, rtol=1e-5), (loss2, ref2)

    print("KERNEL_OK")
</pallas_src>

<mosaic_0001>
module attributes {stable_mosaic.version = 11 : i64} {
  func.func @_cropped_nll_block_kernel(%arg0: i32, %arg1: memref<2x4x16xf32, #tpu.memory_space<vmem>>, %arg2: memref<2x1xi32, #tpu.memory_space<vmem>>, %arg3: memref<1x1xf32, #tpu.memory_space<vmem>>) attributes {dimension_semantics = [#tpu.dimension_semantics<arbitrary>], iteration_bounds = array<i64: 1>, scalar_prefetch = 0 : i64, scratch_operands = 0 : i64, tpu.core_type = #tpu.core_type<tc>, window_params = [{transform_indices = @transform_0, window_bounds = array<i64: 2, 4, 16>}, {transform_indices = @transform_1, window_bounds = array<i64: 2, 1>}, {pipeline_mode = #tpu.pipeline_mode<synchronous>, transform_indices = @transform_2, window_bounds = array<i64: 1, 1>}]} {
    %c0_i32 = arith.constant 0 : i32
    %0 = arith.cmpi eq, %arg0, %c0_i32 : i32
    %1 = arith.extui %0 : i1 to i32
    %c0_i32_0 = arith.constant 0 : i32
    %2 = arith.cmpi ne, %1, %c0_i32_0 : i32
    scf.if %2 {
      %cst_15 = arith.constant 0.000000e+00 : f32
      %33 = vector.broadcast %cst_15 : f32 to vector<1x1xf32>
      %c0_16 = arith.constant 0 : index
      %c0_17 = arith.constant 0 : index
      %34 = vector.load %arg3[%c0_16, %c0_17] : memref<1x1xf32, #tpu.memory_space<vmem>>, vector<1x1xf32>
      tpu.vector_store %arg3[%c0_16, %c0_17], %33 {strides = array<i32>} : memref<1x1xf32, #tpu.memory_space<vmem>>, vector<1x1xf32>,
    } else {
    }
    %c0 = arith.constant 0 : index
    %c0_1 = arith.constant 0 : index
    %c0_2 = arith.constant 0 : index
    %3 = vector.load %arg1[%c0, %c0_1, %c0_2] : memref<2x4x16xf32, #tpu.memory_space<vmem>>, vector<2x4x16xf32>
    %cst = arith.constant dense<0.000000e+00> : vector<2x4xf32>
    %4 = vector.multi_reduction <add>, %3, %cst [2] : vector<2x4x16xf32> to vector<2x4xf32>
    %c0_3 = arith.constant 0 : index
    %c0_4 = arith.constant 0 : index
    %5 = vector.load %arg2[%c0_3, %c0_4] : memref<2x1xi32, #tpu.memory_space<vmem>>, vector<2x1xi32>
    %c0_i32_5 = arith.constant 0 : i32
    %c3_i32 = arith.constant 3 : i32
    %6 = vector.broadcast %c0_i32_5 : i32 to vector<2x1xi32>
    %7 = arith.maxsi %6, %5 : vector<2x1xi32>
    %8 = vector.broadcast %c3_i32 : i32 to vector<2x1xi32>
    %9 = arith.minsi %8, %7 : vector<2x1xi32>
    %10 = tpu.iota {dimensions = array<i32: 1>} : vector<2x4xi32>
    %11 = tpu.iota {dimensions = array<i32: 0>} : vector<2x4xi32>
    %c2_i32 = arith.constant 2 : i32
    %12 = arith.muli %arg0, %c2_i32 : i32
    %13 = vector.broadcast %12 : i32 to vector<2x4xi32>
    %14 = arith.addi %11, %13 : vector<2x4xi32>
    %15 = vector.broadcast %9 : vector<2x1xi32> to vector<2x4xi32>
    %16 = arith.cmpi eq, %10, %15 : vector<2x4xi32>
    %c2_i32_6 = arith.constant 2 : i32
    %17 = vector.broadcast %c2_i32_6 : i32 to vector<2x4xi32>
    %18 = arith.cmpi slt, %14, %17 : vector<2x4xi32>
    %19 = arith.andi %16, %18 : vector<2x4xi1>
    %cst_7 = arith.constant 0.000000e+00 : f32
    %20 = vector.broadcast %cst_7 : f32 to vector<2x4xf32>
    %21 = arith.select %19, %4, %20 : vector<2x4xi1>, vector<2x4xf32>
    %22 = vector.shape_cast %21 : vector<2x4xf32> to vector<1x2x4xf32>
    %cst_8 = arith.constant dense<0.000000e+00> : vector<1xf32>
    %23 = vector.multi_reduction <add>, %22, %cst_8 [1, 2] : vector<1x2x4xf32> to vector<1xf32>
    %24 = vector.shape_cast %23 : vector<1xf32> to vector<1x1x1xf32>
    %25 = vector.extract %24[0, 0, 0] : f32 from vector<1x1x1xf32>
    %c0_9 = arith.constant 0 : index
    %c0_10 = arith.constant 0 : index
    %26 = vector.load %arg3[%c0_9, %c0_10] : memref<1x1xf32, #tpu.memory_space<vmem>>, vector<1x1xf32>
    %27 = vector.broadcast %25 : f32 to vector<1x1xf32>
    %28 = arith.addf %26, %27 : vector<1x1xf32>
    %c0_11 = arith.constant 0 : index
    %c0_12 = arith.constant 0 : index
    %29 = vector.load %arg3[%c0_11, %c0_12] : memref<1x1xf32, #tpu.memory_space<vmem>>, vector<1x1xf32>
    tpu.vector_store %arg3[%c0_11, %c0_12], %28 {strides = array<i32>} : memref<1x1xf32, #tpu.memory_space<vmem>>, vector<1x1xf32>,
    %c0_i32_13 = arith.constant 0 : i32
    %30 = arith.cmpi eq, %arg0, %c0_i32_13 : i32
    %31 = arith.extui %30 : i1 to i32
    %c0_i32_14 = arith.constant 0 : i32
    %32 = arith.cmpi ne, %31, %c0_i32_14 : i32
    scf.if %32 {
      %c0_15 = arith.constant 0 : index
      %c0_16 = arith.constant 0 : index
      %33 = vector.load %arg3[%c0_15, %c0_16] : memref<1x1xf32, #tpu.memory_space<vmem>>, vector<1x1xf32>
      %cst_17 = arith.constant -3.125000e-02 : f32
      %34 = vector.broadcast %cst_17 : f32 to vector<1x1xf32>
      %35 = arith.mulf %33, %34 : vector<1x1xf32>
      %c0_18 = arith.constant 0 : index
      %c0_19 = arith.constant 0 : index
      %36 = vector.load %arg3[%c0_18, %c0_19] : memref<1x1xf32, #tpu.memory_space<vmem>>, vector<1x1xf32>
      tpu.vector_store %arg3[%c0_18, %c0_19], %35 {strides = array<i32>} : memref<1x1xf32, #tpu.memory_space<vmem>>, vector<1x1xf32>,
    } else {
    }
    return
  }
  func.func @transform_0(%arg0: i32) -> (i32, i32, i32) {
    %c0_i32 = arith.constant 0 : i32
    %c0_i32_0 = arith.constant 0 : i32
    %c0_i32_1 = arith.constant 0 : i32
    return %arg0, %c0_i32, %c0_i32_0 : i32, i32, i32
  }
  func.func @transform_1(%arg0: i32) -> (i32, i32) {
    %c0_i32 = arith.constant 0 : i32
    %c0_i32_0 = arith.constant 0 : i32
    return %arg0, %c0_i32 : i32, i32
  }
  func.func @transform_2(%arg0: i32) -> (i32, i32) {
    %c0_i32 = arith.constant 0 : i32
    %c0_i32_0 = arith.constant 0 : i32
    %c0_i32_1 = arith.constant 0 : i32
    return %c0_i32, %c0_i32_0 : i32, i32
  }
}

</mosaic_0001>

<bundles_post_ra>
// kernel: tpu_custom_call.1
= control target key start
LH: loop header
LB: loop body
LE: loop exit
PB: predicated region body
PF: predicated region fallthrough
CT: control target
= control target key end

     0   :  { %7 = vsyncpa [#allocation3], 0  ;;  %s219_s0 = inlined_call_operand.hbm [shape: f32[2,4,16], index: 0, kind: input, shape index: {}]   ;;  %s220_s1 = inlined_call_operand.vmem [shape: s32[2,1], index: 1, kind: input, shape index: {}]   ;;  %s221_s2 = inlined_call_operand.hbm [shape: f32[1,1], index: 2, kind: output, shape index: {}]  }
   0x1   :  { %8 = vsyncpa [#allocation4], 0  ;;  %s168_s9 = smov [#allocation2]   ;;  %s120_s13 = scalar_lea.hbm %s219_s0, 128 }
   0x2   :  { %s14_s10 = sshll.u32 %s168_s9, 4  ;;  %p121_p0 = scmp.ne.s32.totalorder %s219_s0, %s120_s13  ;;  %s15_s10 = int_to_ptr.vmem [resolvable:$true] %s14_s10 }
   0x3   :  { %p124_p1 = scmp.lt.u32.totalorder %s120_s13, %s219_s0 }
   0x5   :  { %p126_p2 = pnand %p124_p1, %p121_p0 }
   0x7   :  { %129 = shalt.err (!%p126_p2)
}
   0x8   :  { %s130_s18 = scalar_lea.vmem %s15_s10, 128  ;;  %p135_p4 = scmp.lt.s32.totalorder %s15_s10, %s15_s10 }
   0x9   :  { %p131_p3 = scmp.ne.s32.totalorder %s15_s10, %s130_s18  ;;  %p136_p5 = scmp.lt.s32.totalorder %s130_s18, %s130_s18 }
   0xb   :  { %p137_p6 = por %p136_p5, %p135_p4 }
   0xd   :  { %p138_p7 = pnand %p137_p6, %p131_p3 }
   0xf   :  { %141 = shalt.err (!%p138_p7)
}
  0x10   :  { %s169_s19 = smov 64   ;;  %s170_s20 = smov 4  }
  0x11   :  { %20 = dma.hbm_to_vmem [thread:$0]  %s219_s0, 128, %s15_s10, [#allocation3], %s169_s19, %s169_s19, %s170_s20  }
  0x12   :  { %164 = dma.done.wait [#allocation3], 128  }
  0x13   :  { %165 = vsyncadd [#allocation3], 4294967168  ;;  %v171_v0 = vmov 0   ;;  %vm34_vm0 = vcmask 125952   ;;  %v32_v1 = vld [vmem:[#allocation2] sm:$0xf]  ;;  %v46_v8 = vlaneseq }
  0x14   :  { %118 = vset.pattern.permute.xlu1 %v171_v0  ;;  %119 = vset.pattern.permute.xlu0 %v171_v0  ;;  %v33_v2 = vld [vmem:[#allocation2 + $0x4] sm:$0xf]  ;;  %v41_v3 = vld [vmem:[%s220_s1] sm:$0x3]  ;;  %v35_v4 = vsel %vm34_vm0, %v32_v1, 0.0  ;;  %vm69_vm5 = vcmask 1041409  }
  0x15   :  { %vm42_vm1 = vcmp.gt.s32.totalorder %v41_v3, 0  ;;  %36 = vadd.xlane.f32.xlu0 %v35_v4  ;;  %v38_v6 = vsel %vm34_vm0, %v33_v2, 0.0  ;;  %v47_v9 = vand.u32 127, %v46_v8  ;;  %v49_v10 = vshrl.u32 %v46_v8, 7  ;;  %s173_s1 = smov [#allocation5]  }
  0x16   :  { %v43_v5 = vsel %vm42_vm1, %v41_v3, 0  ;;  %vm73_vm7 = vcmask 25600   ;;  %vm30_vm8 = vcmask 0   ;;  %v172_v20 = vmov 0.0   ;;  %s101_s25 = sshll.u32 %s173_s1, 4  ;;  %s102_s25 = int_to_ptr.vmem [resolvable:$true] %s101_s25 }
  0x17   :  { %vm44_vm2 = vcmp.lt.s32.totalorder %v43_v5, 3  ;;  %v63_v13 = vsub.s32 %v47_v9, %v49_v10  ;;  %vm57_vm3 = vcmp.lt.s32.totalorder %v49_v10, 2  ;;  %31 = vst.msk [vmem:[#allocation5] sm:$0x1] %vm30_vm8, %v172_v20  ;;  %s142_s26 = scalar_lea.vmem %s102_s25, 16  ;;  %s146_s27 = scalar_lea.vmem %s102_s25, 32 }
  0x18   :  { %v45_v7 = vsel %vm44_vm2, %v43_v5, 3  ;;  %p143_p8 = scmp.ne.s32.totalorder %s102_s25, %s142_s26  ;;  %p147_p9 = scmp.lt.s32.totalorder %s102_s25, %s102_s25 }
  0x19   :  { %54 = vperm.xlu1 %118, %v45_v7   ;;  %39 = vadd.xlane.f32.xlu0 %v38_v6  ;;  %p148_p10 = scmp.lt.s32.totalorder %s146_s27, %s142_s26 }
  0x1b   :  { %p149_p11 = por %p148_p10, %p147_p9 }
  0x1d   :  { %p150_p12 = pnand %p149_p11, %p143_p8 }
  0x1e   :  { %v84_v28 = vld [vmem:[#allocation5] sm:$0x1] }
  0x98   :  { %v55_v11 = vpop.permute.xlu1 %54 }
  0x99   :  { %vm56_vm4 = vcmp.eq.s32.totalorder %v47_v9, %v55_v11 }
  0x9a   :  { %vm58_vm6 = vmand %vm56_vm4, %vm57_vm3 }
  0xa2   :  { %v37_v12 = vpop.xlane.xlu0 %36 }
  0xa3   :  { %v64_v15 = vrot.slane %v37_v12, %v63_v13 }
  0xa6   :  { %v40_v14 = vpop.xlane.xlu0 %39 }
  0xa7   :  { %v68_v16 = vrot.slane %v40_v14, %v63_v13 }
  0xa9   :  { %v70_v17 = vsel %vm69_vm5, %v68_v16, %v64_v15 }
  0xaa   :  { %v72_v18 = vsel %vm58_vm6, %v70_v17, 0.0 }
  0xab   :  { %v74_v19 = vsel %vm73_vm7, %v72_v18, 0.0 }
  0xac   :  { %75 = vadd.xlane.f32.xlu1 %v74_v19 }
 0x139   :  { %v76_v21 = vpop.xlane.xlu1 %75 }
 0x13a   :  { %v77_v22 = vrot.slane %v76_v21, 4 }
 0x13c   :  { %v78_v23 = vadd.f32 %v77_v22, %v76_v21 }
 0x13e   :  { %v79_v24 = vrot.slane %v78_v23, 2 }
 0x140   :  { %v80_v25 = vadd.f32 %v79_v24, %v78_v23 }
 0x142   :  { %v81_v26 = vrot.slane %v80_v25, 1 }
 0x144   :  { %v82_v27 = vadd.f32 %v81_v26, %v80_v25 }
 0x146   :  { %110 = vpush %v82_v27 }
 0x177   :  { %s111_s0 = spop %110 }
 0x178   :  { %v85_v29 = vstv %s111_s0 }
 0x179   :  { %v86_v30 = vadd.f32 %v85_v29, %v84_v28 }
 0x17b   :  { %88 = vst.msk [vmem:[#allocation5] sm:$0x1] %vm30_vm8, %v86_v30 }
 0x182   :  { %v92_v31 = vld [vmem:[#allocation5] sm:$0x1] }
 0x183   :  { %v93_v32 = vmul.f32 -0.03125, %v92_v31 }
 0x185   :  { %94 = vst.msk [vmem:[#allocation5] sm:$0x1] %vm30_vm8, %v93_v32 }
 0x186   :  { %153 = shalt.err (!%p150_p12)
}
 0x187   :  { %s154_s30 = scalar_lea.hbm %s221_s2, 16 }
 0x188   :  { %p155_p13 = scmp.ne.s32.totalorder %s221_s2, %s154_s30  ;;  %p158_p0 = scmp.lt.u32.totalorder %s154_s30, %s221_s2 }
 0x18a   :  { %p160_p1 = pnand %p158_p0, %p155_p13 }
 0x18c   :  { %163 = shalt.err (!%p160_p1)
}
 0x18d   :  { %104 = dma.vmem_to_hbm [thread:$0]  %s102_s25, 16, %s221_s2, [#allocation4]  }
 0x18e   :  { %166 = dma.done.wait [#allocation4], 16  }
 0x18f   :  { %167 = vsyncadd [#allocation4], 4294967280 }
 0x190   :  { %108 = vsyncpa [#allocation3], 1 }
 0x191   :  { %109 = vsyncpa [#allocation4], 1 }

</bundles_post_ra>
